<compile_context>
chip_gen: v7x
topology: tpu7x:2x2x1
jax: 0.10.0
libtpu: 0.0.40
codegen_flags: <defaults>
</compile_context>

<pallas_src>
import jax
import jax.numpy as jnp
from jax.experimental import pallas as pl
from jax.experimental.pallas import tpu as pltpu


def _make_kernel(F, C):
    """Build the per-tile kernel. x_ref: (F, TR, 128) VMEM; out_ref: (TR, 128) VMEM."""
    if C == 2:
        def kernel(x_ref, wd_ref, bd_ref, out_ref):
            # wd_ref: (3, F) SMEM rows = [classifier diff, theta1, theta0-theta1]
            # bd_ref: (3,)   SMEM
            xv = [x_ref[f] for f in range(F)]            # F dense (TR, 128) tiles

            def affine(row):
                acc = bd_ref[row] + wd_ref[row, 0] * xv[0]
                for f in range(1, F):
                    acc = acc + wd_ref[row, f] * xv[f]
                return acc                                # (TR, 128)

            d = affine(0)                                 # logit_1 - logit_0
            theta1 = affine(1)
            dtheta = affine(2)                            # theta_0 - theta_1

            # softmax over 2 categories == sigmoid(-d), stable exp(-|d|) form.
            e = jnp.exp(-jnp.abs(d))                      # EUP, never overflows
            inv = pl.reciprocal(1.0 + e, approx=False)    # exact: kernel is HBM-bound
            phi0 = jnp.where(d >= 0, e * inv, inv)
            out_ref[...] = theta1 + phi0 * dtheta
        return kernel

    def kernel(x_ref, w_cls_ref, b_cls_ref, w_out2_ref, b_out2_ref, out_ref):
        # General small-C path: C is a Python loop, everything stays elementwise
        # along dense (TR, 128) tiles -> no cross-lane XLU reductions, no MXU.
        xv = [x_ref[f] for f in range(F)]

        def affine(w_ref, b_ref, c):
            acc = b_ref[c] + w_ref[c, 0] * xv[0]
            for f in range(1, F):
                acc = acc + w_ref[c, f] * xv[f]
            return acc

        theta = [affine(w_out2_ref, b_out2_ref, c) for c in range(C)]
        logits = [affine(w_cls_ref, b_cls_ref, c) for c in range(C)]

        m = logits[0]
        for c in range(1, C):
            m = jnp.maximum(m, logits[c])
        exps = [jnp.exp(l - m) for l in logits]
        denom = exps[0]
        for c in range(1, C):
            denom = denom + exps[c]
        inv = pl.reciprocal(denom, approx=False)
        acc = exps[0] * theta[0]
        for c in range(1, C):
            acc = acc + exps[c] * theta[c]
        out_ref[...] = acc * inv
    return kernel


def prepare_params(params):
    """One-time parameter preprocessing (hoisted out of the hot path)."""
    w_cls = jnp.asarray(params["classifier_w"], jnp.float32)
    b_cls = jnp.asarray(params["classifier_b"], jnp.float32)
    w_out2 = jnp.asarray(params["fc_out2_w"], jnp.float32)
    b_out2 = jnp.asarray(params["fc_out2_b"], jnp.float32)
    C = w_cls.shape[0]
    if C == 2:
        # Pre-differenced params (perf review): 3 affines instead of 4 + softmax.
        wd = jnp.stack([w_cls[1] - w_cls[0],        # logit_1 - logit_0
                        w_out2[1],                  # theta_1
                        w_out2[0] - w_out2[1]])     # theta_0 - theta_1
        bd = jnp.stack([b_cls[1] - b_cls[0], b_out2[1], b_out2[0] - b_out2[1]])
        return {"n_categories": 2, "wd": wd, "bd": bd}
    return {"n_categories": C, "classifier_w": w_cls, "classifier_b": b_cls,
            "fc_out2_w": w_out2, "fc_out2_b": b_out2}


def _prepare_input(x):
    """x (N, F) -> feature-major (F, NR, 128) f32 with NR = ceil(N/128).

    Pads only up to the next multiple of 128 (never to the tile size).
    TODO(synk): a feature-major producer layout would remove this extra HBM pass.
    """
    N, F = x.shape
    NR = pl.cdiv(N, 128)
    x_t = jnp.swapaxes(x.astype(jnp.float32), 0, 1)        # (F, N)
    if NR * 128 != N:
        x_t = jnp.pad(x_t, ((0, 0), (0, NR * 128 - N)))
    return x_t.reshape(F, NR, 128), NR


def net_map3_forward(x, prepared, *, tile_rows=2048):
    """x: (N, ninputs). prepared: output of prepare_params(). Returns (N, 1) f32."""
    N, F = x.shape
    C = prepared["n_categories"]
    if C < 2:
        # TODO(synk): n_categories == 1 branch simply returns fc_out2(x); not kernelized.
        raise NotImplementedError("kernel implements the n_categories > 1 branch")

    x3, NR = _prepare_input(x)

    # Row-tile size: 2048 rows == 256K batch elements per step (~3 MiB input block,
    # ~8 MiB double-buffered in+out) -- amortizes per-step overhead, fits all gens.
    tr = min(int(tile_rows), NR)
    if tr < NR:
        tr = max(8, (tr // 8) * 8)          # partial tiles must be (8,128)-aligned
    grid = (pl.cdiv(NR, tr),)

    smem_spec = pl.BlockSpec(memory_space=pltpu.MemorySpace.SMEM)
    if C == 2:
        kernel = _make_kernel(F, 2)
        operands = (x3, prepared["wd"], prepared["bd"])
        param_specs = [smem_spec, smem_spec]
    else:
        kernel = _make_kernel(F, C)
        operands = (x3, prepared["classifier_w"], prepared["classifier_b"],
                    prepared["fc_out2_w"], prepared["fc_out2_b"])
        param_specs = [smem_spec] * 4

    out = pl.pallas_call(
        kernel,
        out_shape=jax.ShapeDtypeStruct((NR, 128), jnp.float32),
        grid=grid,
        in_specs=[pl.BlockSpec((F, tr, 128), lambda i: (0, i, 0))] + param_specs,
        out_specs=pl.BlockSpec((tr, 128), lambda i: (i, 0)),
        compiler_params=pltpu.CompilerParams(
            # TODO(synk): on v7x verify both TensorCores engage; if not, switch the
            # batch axis to pltpu.CORE_PARALLEL / pl.core_map for explicit sharding.
            dimension_semantics=("parallel",),
            vmem_limit_bytes=32 * 1024 * 1024,
        ),
    )(*operands)

    flat = out.reshape(NR * 128)
    if NR * 128 != N:
        flat = flat[:N]
    return flat.reshape(N, 1)


def init_params(key, ninputs=3, n_categories=2):
    """Deterministic init mimicking nn.Linear shapes (weight: (out, in), bias: (out,))."""
    ks = jax.random.split(key, 8)
    bound_in = 1.0 / jnp.sqrt(ninputs)
    bound_2 = 1.0 / jnp.sqrt(2.0)
    return {
        # classifier: Linear(ninputs, n_categories)
        "classifier_w": jax.random.uniform(ks[0], (n_categories, ninputs),
                                           minval=-bound_in, maxval=bound_in),
        "classifier_b": jax.random.uniform(ks[1], (n_categories,),
                                           minval=-bound_in, maxval=bound_in),
        # fc1: Linear(ninputs, 2)  (defined in __init__, unused in forward)
        "fc1_w": jax.random.uniform(ks[2], (2, ninputs), minval=-bound_in, maxval=bound_in),
        "fc1_b": jax.random.uniform(ks[3], (2,), minval=-bound_in, maxval=bound_in),
        # fc_out: Linear(2, n_categories)  (defined in __init__, unused in forward)
        "fc_out_w": jax.random.uniform(ks[4], (n_categories, 2), minval=-bound_2, maxval=bound_2),
        "fc_out_b": jax.random.uniform(ks[5], (n_categories,), minval=-bound_2, maxval=bound_2),
        # fc_out2: Linear(ninputs, n_categories)
        "fc_out2_w": jax.random.uniform(ks[6], (n_categories, ninputs),
                                        minval=-bound_in, maxval=bound_in),
        "fc_out2_b": jax.random.uniform(ks[7], (n_categories,),
                                        minval=-bound_in, maxval=bound_in),
    }


def _reference_forward(x, params):
    x = x.astype(jnp.float32)
    theta = x @ params["fc_out2_w"].T.astype(jnp.float32) + params["fc_out2_b"].astype(jnp.float32)
    logits = x @ params["classifier_w"].T.astype(jnp.float32) + params["classifier_b"].astype(jnp.float32)
    phi = jax.nn.softmax(logits, axis=1)
    return jnp.sum(phi * theta, axis=1, keepdims=True)


if __name__ == "__main__":
    key = jax.random.PRNGKey(0)
    k_x, k_x2, k_p = jax.random.split(key, 3)

    N, NINPUTS, N_CATEGORIES = 8, 3, 2
    x = jax.random.normal(k_x, (N, NINPUTS), dtype=jnp.float32)
    params = init_params(k_p, ninputs=NINPUTS, n_categories=N_CATEGORIES)
    prepared = prepare_params(params)

    out = jax.block_until_ready(net_map3_forward(x, prepared))
    ref = _reference_forward(x, params)
    assert out.shape == (N, 1), out.shape
    assert jnp.allclose(out, ref, atol=1e-5, rtol=1e-5), (out, ref)

    # Second, slightly larger batch to exercise the pad-to-128 / output-slice path.
    N2 = 300
    x2 = jax.random.normal(k_x2, (N2, NINPUTS), dtype=jnp.float32)
    out2 = jax.block_until_ready(net_map3_forward(x2, prepared))
    ref2 = _reference_forward(x2, params)
    assert out2.shape == (N2, 1), out2.shape
    assert jnp.allclose(out2, ref2, atol=1e-5, rtol=1e-5)

    print("KERNEL_OK")
</pallas_src>

<mosaic_0001>
module attributes {stable_mosaic.version = 11 : i64} {
  func.func @kernel(%arg0: i32, %arg1: memref<3x1x128xf32, #tpu.memory_space<vmem>>, %arg2: memref<3x3xf32, #tpu.memory_space<smem>>, %arg3: memref<3xf32, #tpu.memory_space<smem>>, %arg4: memref<1x128xf32, #tpu.memory_space<vmem>>) attributes {dimension_semantics = [#tpu.dimension_semantics<parallel>], iteration_bounds = array<i64: 1>, scalar_prefetch = 0 : i64, scratch_operands = 0 : i64, tpu.core_type = #tpu.core_type<tc>, window_params = [{transform_indices = @transform_0, window_bounds = array<i64: 3, 1, 128>}, {transform_indices = @transform_1, window_bounds = array<i64: 3, 3>}, {transform_indices = @transform_2, window_bounds = array<i64: 3>}, {transform_indices = @transform_3, window_bounds = array<i64: 1, 128>}]} {
    %c0 = arith.constant 0 : index
    %c0_0 = arith.constant 0 : index
    %c0_1 = arith.constant 0 : index
    %0 = vector.load %arg1[%c0, %c0_0, %c0_1] : memref<3x1x128xf32, #tpu.memory_space<vmem>>, vector<1x1x128xf32>
    %1 = vector.shape_cast %0 : vector<1x1x128xf32> to vector<1x128xf32>
    %c1 = arith.constant 1 : index
    %c0_2 = arith.constant 0 : index
    %c0_3 = arith.constant 0 : index
    %2 = vector.load %arg1[%c1, %c0_2, %c0_3] : memref<3x1x128xf32, #tpu.memory_space<vmem>>, vector<1x1x128xf32>
    %3 = vector.shape_cast %2 : vector<1x1x128xf32> to vector<1x128xf32>
    %c2 = arith.constant 2 : index
    %c0_4 = arith.constant 0 : index
    %c0_5 = arith.constant 0 : index
    %4 = vector.load %arg1[%c2, %c0_4, %c0_5] : memref<3x1x128xf32, #tpu.memory_space<vmem>>, vector<1x1x128xf32>
    %5 = vector.shape_cast %4 : vector<1x1x128xf32> to vector<1x128xf32>
    %c0_6 = arith.constant 0 : index
    %6 = memref.load %arg3[%c0_6] : memref<3xf32, #tpu.memory_space<smem>>
    %c0_7 = arith.constant 0 : index
    %c0_8 = arith.constant 0 : index
    %7 = memref.load %arg2[%c0_7, %c0_8] : memref<3x3xf32, #tpu.memory_space<smem>>
    %8 = vector.broadcast %7 : f32 to vector<1x128xf32>
    %9 = arith.mulf %8, %1 : vector<1x128xf32>
    %10 = vector.broadcast %6 : f32 to vector<1x128xf32>
    %11 = arith.addf %10, %9 : vector<1x128xf32>
    %c0_9 = arith.constant 0 : index
    %c1_10 = arith.constant 1 : index
    %12 = memref.load %arg2[%c0_9, %c1_10] : memref<3x3xf32, #tpu.memory_space<smem>>
    %13 = vector.broadcast %12 : f32 to vector<1x128xf32>
    %14 = arith.mulf %13, %3 : vector<1x128xf32>
    %15 = arith.addf %11, %14 : vector<1x128xf32>
    %c0_11 = arith.constant 0 : index
    %c2_12 = arith.constant 2 : index
    %16 = memref.load %arg2[%c0_11, %c2_12] : memref<3x3xf32, #tpu.memory_space<smem>>
    %17 = vector.broadcast %16 : f32 to vector<1x128xf32>
    %18 = arith.mulf %17, %5 : vector<1x128xf32>
    %19 = arith.addf %15, %18 : vector<1x128xf32>
    %c1_13 = arith.constant 1 : index
    %20 = memref.load %arg3[%c1_13] : memref<3xf32, #tpu.memory_space<smem>>
    %c1_14 = arith.constant 1 : index
    %c0_15 = arith.constant 0 : index
    %21 = memref.load %arg2[%c1_14, %c0_15] : memref<3x3xf32, #tpu.memory_space<smem>>
    %22 = vector.broadcast %21 : f32 to vector<1x128xf32>
    %23 = arith.mulf %22, %1 : vector<1x128xf32>
    %24 = vector.broadcast %20 : f32 to vector<1x128xf32>
    %25 = arith.addf %24, %23 : vector<1x128xf32>
    %c1_16 = arith.constant 1 : index
    %c1_17 = arith.constant 1 : index
    %26 = memref.load %arg2[%c1_16, %c1_17] : memref<3x3xf32, #tpu.memory_space<smem>>
    %27 = vector.broadcast %26 : f32 to vector<1x128xf32>
    %28 = arith.mulf %27, %3 : vector<1x128xf32>
    %29 = arith.addf %25, %28 : vector<1x128xf32>
    %c1_18 = arith.constant 1 : index
    %c2_19 = arith.constant 2 : index
    %30 = memref.load %arg2[%c1_18, %c2_19] : memref<3x3xf32, #tpu.memory_space<smem>>
    %31 = vector.broadcast %30 : f32 to vector<1x128xf32>
    %32 = arith.mulf %31, %5 : vector<1x128xf32>
    %33 = arith.addf %29, %32 : vector<1x128xf32>
    %c2_20 = arith.constant 2 : index
    %34 = memref.load %arg3[%c2_20] : memref<3xf32, #tpu.memory_space<smem>>
    %c2_21 = arith.constant 2 : index
    %c0_22 = arith.constant 0 : index
    %35 = memref.load %arg2[%c2_21, %c0_22] : memref<3x3xf32, #tpu.memory_space<smem>>
    %36 = vector.broadcast %35 : f32 to vector<1x128xf32>
    %37 = arith.mulf %36, %1 : vector<1x128xf32>
    %38 = vector.broadcast %34 : f32 to vector<1x128xf32>
    %39 = arith.addf %38, %37 : vector<1x128xf32>
    %c2_23 = arith.constant 2 : index
    %c1_24 = arith.constant 1 : index
    %40 = memref.load %arg2[%c2_23, %c1_24] : memref<3x3xf32, #tpu.memory_space<smem>>
    %41 = vector.broadcast %40 : f32 to vector<1x128xf32>
    %42 = arith.mulf %41, %3 : vector<1x128xf32>
    %43 = arith.addf %39, %42 : vector<1x128xf32>
    %c2_25 = arith.constant 2 : index
    %c2_26 = arith.constant 2 : index
    %44 = memref.load %arg2[%c2_25, %c2_26] : memref<3x3xf32, #tpu.memory_space<smem>>
    %45 = vector.broadcast %44 : f32 to vector<1x128xf32>
    %46 = arith.mulf %45, %5 : vector<1x128xf32>
    %47 = arith.addf %43, %46 : vector<1x128xf32>
    %48 = math.absf %19 : vector<1x128xf32>
    %cst = arith.constant 0.000000e+00 : f32
    %49 = vector.broadcast %cst : f32 to vector<1x128xf32>
    %50 = arith.subf %49, %48 : vector<1x128xf32>
    %51 = math.exp %50 : vector<1x128xf32>
    %cst_27 = arith.constant 1.000000e+00 : f32
    %52 = vector.broadcast %cst_27 : f32 to vector<1x128xf32>
    %53 = arith.addf %52, %51 : vector<1x128xf32>
    %54 = tpu.reciprocal %53 : vector<1x128xf32> -> vector<1x128xf32>
    %cst_28 = arith.constant 0.000000e+00 : f32
    %55 = vector.broadcast %cst_28 : f32 to vector<1x128xf32>
    %56 = arith.cmpf oge, %19, %55 : vector<1x128xf32>
    %57 = arith.mulf %51, %54 : vector<1x128xf32>
    %58 = arith.select %56, %57, %54 : vector<1x128xi1>, vector<1x128xf32>
    %59 = arith.mulf %58, %47 : vector<1x128xf32>
    %60 = arith.addf %33, %59 : vector<1x128xf32>
    %c0_29 = arith.constant 0 : index
    %c0_30 = arith.constant 0 : index
    %61 = vector.load %arg4[%c0_29, %c0_30] : memref<1x128xf32, #tpu.memory_space<vmem>>, vector<1x128xf32>
    tpu.vector_store %arg4[%c0_29, %c0_30], %60 {strides = array<i32>} : memref<1x128xf32, #tpu.memory_space<vmem>>, vector<1x128xf32>,
    return
  }
  func.func @transform_0(%arg0: i32) -> (i32, i32, i32) {
    %c0_i32 = arith.constant 0 : i32
    %c0_i32_0 = arith.constant 0 : i32
    %c0_i32_1 = arith.constant 0 : i32
    return %c0_i32, %arg0, %c0_i32_0 : i32, i32, i32
  }
  func.func @transform_1(%arg0: i32) -> (i32, i32) {
    %c0_i32 = arith.constant 0 : i32
    %c0_i32_0 = arith.constant 0 : i32
    %c0_i32_1 = arith.constant 0 : i32
    return %c0_i32, %c0_i32_0 : i32, i32
  }
  func.func @transform_2(%arg0: i32) -> i32 {
    %c0_i32 = arith.constant 0 : i32
    %c0_i32_0 = arith.constant 0 : i32
    return %c0_i32 : i32
  }
  func.func @transform_3(%arg0: i32) -> (i32, i32) {
    %c0_i32 = arith.constant 0 : i32
    %c0_i32_0 = arith.constant 0 : i32
    return %arg0, %c0_i32 : i32, i32
  }
}

</mosaic_0001>

<bundles_post_ra>
// kernel: tpu_custom_call.1
= control target key start
LH: loop header
LB: loop body
LE: loop exit
PB: predicated region body
PF: predicated region fallthrough
CT: control target
= control target key end

     0   :  { %8 = vsyncpa [#allocation3], 0  ;;  %s287_s0 = inlined_call_operand.hbm [shape: f32[3,1,128], index: 0, kind: input, shape index: {}]   ;;  %s288_s1 = inlined_call_operand.hbm [shape: f32[3,3], index: 1, kind: input, shape index: {}]   ;;  %s289_s2 = inlined_call_operand.vmem [shape: f32[3], index: 2, kind: input, shape index: {}]   ;;  %s290_s3 = inlined_call_operand.hbm [shape: f32[1,128], index: 3, kind: output, shape index: {}]  }
   0x1   :  { %9 = vsyncpa [#allocation5], 0 }
   0x2   :  { %10 = vsyncpa [#allocation6], 0 }
   0x3   :  { %11 = vsyncpa [#allocation4], 0  ;;  %s222_s12 = smov [#allocation2]   ;;  %s148_s16 = scalar_lea.hbm %s287_s0, 48 }
   0x4   :  { %s17_s13 = sshll.u32 %s222_s12, 4  ;;  %p149_p0 = scmp.ne.s32.totalorder %s287_s0, %s148_s16  ;;  %s18_s13 = int_to_ptr.vmem [resolvable:$true] %s17_s13 }
   0x5   :  { %p152_p1 = scmp.lt.u32.totalorder %s148_s16, %s287_s0 }
   0x7   :  { %p154_p2 = pnand %p152_p1, %p149_p0 }
   0x9   :  { %157 = shalt.err (!%p154_p2)
}
   0xa   :  { %s158_s21 = scalar_lea.vmem %s18_s13, 48  ;;  %s162_s22 = scalar_lea.vmem %s18_s13, 64 }
   0xb   :  { %p159_p3 = scmp.ne.s32.totalorder %s18_s13, %s158_s21  ;;  %p163_p4 = scmp.lt.s32.totalorder %s18_s13, %s18_s13 }
   0xc   :  { %p164_p5 = scmp.lt.s32.totalorder %s162_s22, %s158_s21 }
   0xe   :  { %p165_p6 = por %p164_p5, %p163_p4 }
  0x10   :  { %p166_p7 = pnand %p165_p6, %p159_p3 }
  0x12   :  { %169 = shalt.err (!%p166_p7)
}
  0x13   :  { %s223_s23 = smov 16   ;;  %s224_s24 = smov 1  }
  0x14   :  { %23 = dma.hbm_to_vmem [thread:$0]  %s287_s0, 48, %s18_s13, [#allocation3], %s223_s23, %s223_s23, %s224_s24  }
  0x15   :  { %s170_s29 = scalar_lea.hbm %s288_s1, 64 }
  0x16   :  { %p171_p8 = scmp.ne.s32.totalorder %s288_s1, %s170_s29  ;;  %p174_p9 = scmp.lt.u32.totalorder %s170_s29, %s288_s1 }
  0x18   :  { %p176_p10 = pnand %p174_p9, %p171_p8 }
  0x1a   :  { %179 = shalt.err (!%p176_p10)
}
  0x1b   :  { %s225_s7 = smov [#allocation7]   ;;  %s38_s11 = sshll.u32 %s289_s2, 4  ;;  %s39_s11 = int_to_ptr.vmem [resolvable:$true] %s38_s11 }
  0x1c   :  { %31 = dma.hbm_to_smem %s288_s1, 64, %s225_s7, [#allocation5]  }
  0x1d   :  { %s180_s12 = scalar_lea.vmem %s39_s11, 16  ;;  %p185_p12 = scmp.lt.s32.totalorder %s39_s11, %s39_s11 }
  0x1e   :  { %p181_p11 = scmp.ne.s32.totalorder %s39_s11, %s180_s12  ;;  %p186_p13 = scmp.lt.s32.totalorder %s180_s12, %s180_s12 }
  0x20   :  { %p187_p0 = por %p186_p13, %p185_p12 }
  0x22   :  { %p188_p1 = pnand %p187_p0, %p181_p11 }
  0x24   :  { %191 = shalt.err (!%p188_p1)
}
  0x25   :  { %s226_s13 = smov [#allocation8]  }
  0x26   :  { %41 = dma.vmem_to_smem %s39_s11, 16, %s226_s13, [#allocation6]  }
  0x27   :  { %214 = dma.done.wait [#allocation3], 48  }
  0x28   :  { %215 = vsyncadd [#allocation3], 4294967248 }
  0x29   :  { %216 = dma.done.wait [#allocation5], 64  }
  0x2a   :  { %217 = vsyncadd [#allocation5], 4294967232 }
  0x2b   :  { %218 = dma.done.wait [#allocation6], 16  }
  0x2c   :  { %219 = vsyncadd [#allocation6], 4294967280 }
  0x2d   :  { %51 = sfence }
  0x2e   :  { %s57_s1 = sld [smem:[#allocation8]]  ;;  %s128_s2 = sld [smem:[#allocation7 + $0x1]]  ;;  %v52_v0 = vld [vmem:[#allocation2] sm:$0x1]  ;;  %v54_v1 = vld [vmem:[#allocation2 + $0x1] sm:$0x1] }
  0x2f   :  { %s58_s14 = sld [smem:[#allocation7]]  ;;  %s129_s15 = sld [smem:[#allocation7 + $0x2]]  ;;  %v56_v2 = vld [vmem:[#allocation2 + $0x2] sm:$0x1] }
  0x30   :  { %s135_s16 = sld [smem:[#allocation7 + $0x100]]  ;;  %s134_s18 = sld [smem:[#allocation8 + $0x2]] }
  0x31   :  { %s131_s17 = sld [smem:[#allocation7 + $0x80]]  ;;  %s136_s19 = sld [smem:[#allocation7 + $0x101]] }
  0x32   :  { %s130_s20 = sld [smem:[#allocation8 + $0x1]]  ;;  %s137_s22 = sld [smem:[#allocation7 + $0x102]] }
  0x33   :  { %s132_s21 = sld [smem:[#allocation7 + $0x81]]  ;;  %s133_s23 = sld [smem:[#allocation7 + $0x82]] }
  0x34   :  { %v61_v4 = vstv %s57_s1  ;;  %v64_v6 = vstv %s128_s2  ;;  %s227_s24 = smov [#allocation9]  }
  0x35   :  { %v59_v3 = vstv %s58_s14  ;;  %v68_v7 = vstv %s129_s15  ;;  %v65_v8 = vmul.f32 %v64_v6, %v54_v1  ;;  %s117_s25 = sshll.u32 %s227_s24, 4  ;;  %s118_s25 = int_to_ptr.vmem [resolvable:$true] %s117_s25 }
  0x36   :  { %v60_v5 = vmul.f32 %v59_v3, %v52_v0  ;;  %v69_v10 = vmul.f32 %v68_v7, %v56_v2  ;;  %v87_v16 = vstv %s135_s16  ;;  %v89_v21 = vstv %s134_s18  ;;  %s192_s26 = scalar_lea.vmem %s118_s25, 16  ;;  %s196_s27 = scalar_lea.vmem %s118_s25, 32 }
  0x37   :  { %v73_v18 = vstv %s131_s17  ;;  %v88_v19 = vmul.f32 %v87_v16, %v52_v0  ;;  %v92_v22 = vstv %s136_s19  ;;  %p193_p2 = scmp.ne.s32.totalorder %s118_s25, %s192_s26  ;;  %p197_p3 = scmp.lt.s32.totalorder %s118_s25, %s118_s25 }
  0x38   :  { %v62_v9 = vadd.f32 %v61_v4, %v60_v5  ;;  %v74_v23 = vmul.f32 %v73_v18, %v52_v0  ;;  %v75_v24 = vstv %s130_s20  ;;  %v93_v27 = vmul.f32 %v92_v22, %v54_v1  ;;  %p198_p4 = scmp.lt.s32.totalorder %s196_s27, %s192_s26 }
  0x39   :  { %v78_v25 = vstv %s132_s21  ;;  %v90_v26 = vadd.f32 %v89_v21, %v88_v19  ;;  %v96_v28 = vstv %s137_s22  ;;  %v82_v31 = vstv %s133_s23 }
  0x3a   :  { %v66_v11 = vadd.f32 %v65_v8, %v62_v9  ;;  %v76_v29 = vadd.f32 %v75_v24, %v74_v23  ;;  %v79_v30 = vmul.f32 %v78_v25, %v54_v1  ;;  %v97_v33 = vmul.f32 %v96_v28, %v56_v2  ;;  %p199_p5 = por %p198_p4, %p197_p3 }
  0x3b   :  { %v94_v32 = vadd.f32 %v93_v27, %v90_v26  ;;  %v83_v35 = vmul.f32 %v82_v31, %v56_v2 }
  0x3c   :  { %v70_v12 = vadd.f32 %v69_v10, %v66_v11  ;;  %v80_v34 = vadd.f32 %v79_v30, %v76_v29  ;;  %p200_p6 = pnand %p199_p5, %p193_p2 }
  0x3d   :  { %v98_v37 = vadd.f32 %v97_v33, %v94_v32 }
  0x3e   :  { %v99_v13 = vand.u32 2147483647, %v70_v12  ;;  %vm105_vm0 = vcmp.ge.f32.partialorder %v70_v12, 0.0  ;;  %v84_v39 = vadd.f32 %v83_v35, %v80_v34 }
  0x40   :  { %v100_v14 = vsub.f32 0.0, %v99_v13 }
  0x42   :  { %v101_v15 = vmul.f32 1.442695, %v100_v14 }
  0x44   :  { %144 = vpow2.f32 %v101_v15 }
  0x4e   :  { %v145_v17 = vpop.eup %144 }
  0x4f   :  { %v103_v20 = vadd.f32 1.0, %v145_v17 }
  0x51   :  { %146 = vrcp.f32 %v103_v20 }
  0x5b   :  { %v147_v36 = vpop.eup %146 }
  0x5c   :  { %v106_v38 = vmul.f32 %v147_v36, %v145_v17 }
  0x5e   :  { %v107_v40 = vsel %vm105_vm0, %v106_v38, %v147_v36 }
  0x5f   :  { %v108_v41 = vmul.f32 %v107_v40, %v98_v37 }
  0x61   :  { %v109_v42 = vadd.f32 %v108_v41, %v84_v39 }
  0x63   :  { %110 = vst [vmem:[#allocation9] sm:$0x1] %v109_v42 }
  0x64   :  { %203 = shalt.err (!%p200_p6)
}
  0x65   :  { %s204_s30 = scalar_lea.hbm %s290_s3, 16 }
  0x66   :  { %p205_p7 = scmp.ne.s32.totalorder %s290_s3, %s204_s30  ;;  %p208_p8 = scmp.lt.u32.totalorder %s204_s30, %s290_s3 }
  0x68   :  { %p210_p9 = pnand %p208_p8, %p205_p7 }
  0x6a   :  { %213 = shalt.err (!%p210_p9)
}
  0x6b   :  { %120 = dma.vmem_to_hbm [thread:$0]  %s118_s25, 16, %s290_s3, [#allocation4]  }
  0x6c   :  { %220 = dma.done.wait [#allocation4], 16  }
  0x6d   :  { %221 = vsyncadd [#allocation4], 4294967280 }
  0x6e   :  { %124 = vsyncpa [#allocation3], 1 }
  0x6f   :  { %125 = vsyncpa [#allocation4], 1 }
  0x70   :  { %126 = vsyncpa [#allocation5], 1 }
  0x71   :  { %127 = vsyncpa [#allocation6], 1 }

</bundles_post_ra>
